<compile_context>
chip_gen: v5e
topology: v5e:2x2
jax: 0.10.0
libtpu: 0.0.40
codegen_flags: <defaults>
</compile_context>

<pallas_src>
import jax
import jax.numpy as jnp
from jax.experimental import pallas as pl
from jax.experimental.pallas import tpu as pltpu

_LANES = 128                        # full vreg lane width
_SUBLANE_ALIGN = 32                 # safe row granularity for f32 / bf16 / int8
_DEFAULT_MAX_TILE_BYTES = 8 << 20   # ~8 MiB/buffer; 2 in + 2 out bufs = 32 MiB
_SMALL_INPUT_BYTES = 256 << 10      # below this, aliasing beats any launch


def _identity_kernel(x_ref, o_ref):
    # TODO(synk): a real edge-feature layer's math (matmul / elementwise) goes
    # here; NoLayer itself has nothing to compute.
    o_ref[...] = x_ref[...]


def _choose_view(x: jax.Array):
    """Pick a 2-D (rows, cols) view of x that is a pure (free) reshape."""
    n = x.size
    if n % _LANES == 0:
        return n // _LANES, _LANES            # lane-dense: unmasked vst
    if x.ndim >= 1:
        cols = x.shape[-1]                    # full-extent last dim: legal block,
        return n // cols, cols                # no padding, no extra HBM pass
    return n, 1


def _choose_tile_rows(rows: int, cols: int, itemsize: int, max_tile_bytes: int) -> int:
    bytes_per_row = max(1, cols * itemsize)
    max_tile_rows = max(
        _SUBLANE_ALIGN,
        (max_tile_bytes // bytes_per_row) // _SUBLANE_ALIGN * _SUBLANE_ALIGN,
    )
    if rows > max_tile_rows:
        return max_tile_rows
    # Whole array fits one tile.  A grid of (1,) leaves v7x's second TensorCore
    # idle, so split into >=2 sublane-aligned blocks when the row count allows.
    if rows >= 2 * _SUBLANE_ALIGN:
        return pl.cdiv(pl.cdiv(rows, 2), _SUBLANE_ALIGN) * _SUBLANE_ALIGN
    return rows                               # single full-extent block (always legal)


def _identity_passthrough(x: jax.Array,
                          *,
                          max_tile_bytes: int = _DEFAULT_MAX_TILE_BYTES,
                          force_kernel: bool = False) -> jax.Array:
    """Structural placeholder: lane-aware, large-tile Pallas identity copy.

    NOT used by NoLayer.forward (which returns None).  For a true identity the
    fast path simply returns the input (zero HBM traffic); the kernel path is
    only exercised to show where a real edge-feature layer's kernel would go.
    """
    if x.size == 0:
        return x

    rows, cols = _choose_view(x)
    itemsize = jnp.dtype(x.dtype).itemsize
    total_bytes = x.size * itemsize

    # Fast path (perf review): tiny inputs or whole-array-in-one-tile -> alias.
    if not force_kernel and (total_bytes < _SMALL_INPUT_BYTES
                             or total_bytes <= max_tile_bytes):
        return x

    x2d = x.reshape(rows, cols)               # metadata-only for contiguous x
    tile_rows = _choose_tile_rows(rows, cols, itemsize, max_tile_bytes)
    grid = (pl.cdiv(rows, tile_rows),)        # ragged last block handled by Mosaic

    tile_bytes = tile_rows * cols * itemsize
    # Right-size scoped VMEM: 2 double-buffered input bufs + 2 output bufs
    # plus a little headroom; never over-request a fixed huge limit.
    vmem_limit = int(min(max(4 * tile_bytes + (2 << 20), 8 << 20), 48 << 20))

    y2d = pl.pallas_call(
        _identity_kernel,
        out_shape=jax.ShapeDtypeStruct((rows, cols), x2d.dtype),
        grid=grid,
        in_specs=[pl.BlockSpec((tile_rows, cols), lambda i: (i, 0))],
        out_specs=pl.BlockSpec((tile_rows, cols), lambda i: (i, 0)),
        compiler_params=pltpu.CompilerParams(
            dimension_semantics=("parallel",),   # shard blocks across TCs (v7x)
            vmem_limit_bytes=vmem_limit,
        ),
    )(x2d)

    return y2d.reshape(x.shape)


class GTau:
    """Minimal stand-in for lgn.GTau (a multiplicity/type container)."""

    def __init__(self, taus):
        self.taus = dict(taus) if not isinstance(taus, dict) else taus

    def __repr__(self):
        return f"GTau({self.taus})"


class NoLayer:
    """JAX/Pallas port of lgn.nn.utils.NoLayer.

    Does nothing: forward returns None, has no parameters, launches no kernel.
    """

    def __init__(self, *args, **kwargs):
        # No parameters to initialize (matches the PyTorch __init__).
        pass

    def __call__(self, *args, **kwargs):
        return self.forward(*args, **kwargs)

    def forward(self, *args, **kwargs):
        # The reference forward has no compute; NoLayer intentionally launches
        # nothing.  A real edge-feature layer would call a kernel shaped like
        # _identity_passthrough's (with actual math) here.
        return None

    @property
    def tau(self):
        return GTau([])

    @property
    def num_scalars(self):
        return 0


if __name__ == "__main__":
    key = jax.random.PRNGKey(0)
    # Small example input consistent with a typical LGN edge-feature tensor:
    # (batch, seq, hidden) = (2, 8, 32) -> 512 elements -> lane-dense (4, 128).
    batch, seq, hidden = 2, 8, 32
    x = jax.random.normal(key, (batch, seq, hidden), dtype=jnp.float32)

    layer = NoLayer()

    # Exact semantics check: forward returns None, no parameters, no kernel.
    out = layer(x)
    assert out is None, "NoLayer.forward must return None"
    assert layer.num_scalars == 0
    assert isinstance(layer.tau, GTau)

    # Fast path: a pure identity on a small array is an alias (no pallas_call).
    y0 = _identity_passthrough(x)
    assert y0 is x

    # Exercise the structural placeholder Pallas kernel (single lane-dense
    # full-extent block for this small input).
    y = _identity_passthrough(x, force_kernel=True)
    jax.block_until_ready(y)
    assert y.shape == x.shape and y.dtype == x.dtype
    assert bool(jnp.allclose(y, x))

    # Also exercise the multi-block path with a ragged (non-lane-dense,
    # non-dividing) shape and a tiny tile cap: no padding, no trailing slice;
    # the last grid block is partial and handled by Mosaic's boundary masking.
    x2 = jax.random.normal(key, (95, 7, 33), dtype=jnp.float32)
    y2 = _identity_passthrough(x2, max_tile_bytes=16 << 10, force_kernel=True)
    jax.block_until_ready(y2)
    assert y2.shape == x2.shape and y2.dtype == x2.dtype
    assert bool(jnp.allclose(y2, x2))

    print("KERNEL_OK")
</pallas_src>

<mosaic_0001>
module attributes {stable_mosaic.version = 11 : i64} {
  func.func @_identity_kernel(%arg0: i32, %arg1: memref<4x128xf32, #tpu.memory_space<vmem>>, %arg2: memref<4x128xf32, #tpu.memory_space<vmem>>) attributes {dimension_semantics = [#tpu.dimension_semantics<parallel>], iteration_bounds = array<i64: 1>, scalar_prefetch = 0 : i64, scratch_operands = 0 : i64, tpu.core_type = #tpu.core_type<tc>, window_params = [{transform_indices = @transform_0, window_bounds = array<i64: 4, 128>}, {transform_indices = @transform_1, window_bounds = array<i64: 4, 128>}]} {
    %c0 = arith.constant 0 : index
    %c0_0 = arith.constant 0 : index
    %0 = vector.load %arg1[%c0, %c0_0] : memref<4x128xf32, #tpu.memory_space<vmem>>, vector<4x128xf32>
    %c0_1 = arith.constant 0 : index
    %c0_2 = arith.constant 0 : index
    %1 = vector.load %arg2[%c0_1, %c0_2] : memref<4x128xf32, #tpu.memory_space<vmem>>, vector<4x128xf32>
    tpu.vector_store %arg2[%c0_1, %c0_2], %0 {strides = array<i32>} : memref<4x128xf32, #tpu.memory_space<vmem>>, vector<4x128xf32>,
    return
  }
  func.func @transform_0(%arg0: i32) -> (i32, i32) {
    %c0_i32 = arith.constant 0 : i32
    %c0_i32_0 = arith.constant 0 : i32
    return %arg0, %c0_i32 : i32, i32
  }
  func.func @transform_1(%arg0: i32) -> (i32, i32) {
    %c0_i32 = arith.constant 0 : i32
    %c0_i32_0 = arith.constant 0 : i32
    return %arg0, %c0_i32 : i32, i32
  }
}

</mosaic_0001>

<bundles_post_ra>
// kernel: tpu_custom_call.1
= control target key start
LH: loop header
LB: loop body
LE: loop exit
PB: predicated region body
PF: predicated region fallthrough
CT: control target
= control target key end

     0   :  { %6 = vsyncpa [#allocation3], 0  ;;  %s114_s0 = inlined_call_operand.hbm [shape: f32[4,128], index: 0, kind: input, shape index: {}]   ;;  %s115_s1 = inlined_call_operand.hbm [shape: f32[4,128], index: 1, kind: output, shape index: {}]  }
   0x1   :  { %7 = vsyncpa [#allocation4], 0  ;;  %s13_s8 = sshll.u32 %s114_s0, 4  ;;  %s96_s9 = smov [#allocation2]   ;;  %s14_s8 = int_to_ptr.hbm [resolvable:$true] %s13_s8 }
   0x2   :  { %s15_s10 = sshll.u32 %s96_s9, 4  ;;  %s16_s10 = int_to_ptr.vmem [resolvable:$true] %s15_s10 }
   0x3   :  { %18 = dma.hbm_to_vmem [thread:$0]  %s14_s8, 64, %s16_s10, [#allocation3]  }
   0x4   :  { %92 = dma.done.wait [#allocation3], 64  }
   0x5   :  { %93 = vsyncadd [#allocation3], 4294967232  ;;  %s97_s11 = smov [#allocation5]   ;;  %s32_s15 = sshll.u32 %s115_s1, 4  ;;  %v23_v0 = vld [vmem:[#allocation2] sm:$0xf]  ;;  %s33_s15 = int_to_ptr.hbm [resolvable:$true] %s32_s15 }
   0x6   :  { %s30_s12 = sshll.u32 %s97_s11, 4  ;;  %24 = vst [vmem:[#allocation5] sm:$0xf] %v23_v0  ;;  %s31_s12 = int_to_ptr.vmem [resolvable:$true] %s30_s12 }
   0x7   :  { %35 = dma.vmem_to_hbm [thread:$0]  %s31_s12, 64, %s33_s15, [#allocation4]  }
   0x8   :  { %94 = dma.done.wait [#allocation4], 64  }
   0x9   :  { %95 = vsyncadd [#allocation4], 4294967232 }
   0xa   :  { %40 = vsyncpa [#allocation3], 1 }
   0xb   :  { %41 = vsyncpa [#allocation4], 1 }

</bundles_post_ra>
